<compile_context>
chip_gen: v7x
topology: tpu7x:2x2x1
jax: 0.10.0
libtpu: 0.0.40
codegen_flags: <defaults>
</compile_context>

<pallas_src>
import math

import jax
import jax.numpy as jnp
from jax.experimental import pallas as pl
from jax.experimental.pallas import tpu as pltpu

_VMEM_LIMIT = 32 * 1024 * 1024  # explicit, with headroom on all generations


# -----------------------------------------------------------------------------
# Kernel 1: per-channel statistics only (mean, unbiased std, 1/std)
# -----------------------------------------------------------------------------
def _stats_kernel(x_ref, mean_ref, std_ref, istd_ref):
    # x_ref: (R, HW) fp32 -- R rows = folded (batch, channel), HW on lanes.
    x = x_ref[...]
    hw = x.shape[-1]
    mean = jnp.mean(x, axis=-1, keepdims=True)
    diff = x - mean
    var = jnp.sum(diff * diff, axis=-1, keepdims=True) * (1.0 / (hw - 1))
    mean_ref[...] = mean
    std_ref[...] = jnp.sqrt(var)              # unbiased std (torch.std)
    istd_ref[...] = jax.lax.rsqrt(var)        # EUP, avoids VALU division later


def norm_stats(x):
    """x: (B, C, H, W) -> (mean, std, inv_std) each of shape (B, C, 1)."""
    B, C, H, W = x.shape
    BC, HW = B * C, H * W
    xf = x.reshape(BC, HW)
    R = 8 if BC % 8 == 0 else BC              # fill all 8 sublanes when possible
    mean, std, istd = pl.pallas_call(
        _stats_kernel,
        out_shape=(
            jax.ShapeDtypeStruct((BC, 1), x.dtype),
            jax.ShapeDtypeStruct((BC, 1), x.dtype),
            jax.ShapeDtypeStruct((BC, 1), x.dtype),
        ),
        grid=(BC // R,),
        in_specs=[pl.BlockSpec((R, HW), lambda r: (r, 0))],
        out_specs=(
            pl.BlockSpec((R, 1), lambda r: (r, 0)),
            pl.BlockSpec((R, 1), lambda r: (r, 0)),
            pl.BlockSpec((R, 1), lambda r: (r, 0)),
        ),
        compiler_params=pltpu.CompilerParams(
            dimension_semantics=("parallel",),
            vmem_limit_bytes=_VMEM_LIMIT),
    )(xf)
    return (mean.reshape(B, C, 1), std.reshape(B, C, 1), istd.reshape(B, C, 1))


# -----------------------------------------------------------------------------
# Kernel 2: fused normalize -> (3x3 conv -> SiLU -> 1x1 conv) -> unnorm
# -----------------------------------------------------------------------------
def _pick_row_tile(hp, wp, n):
    """Row-tile TH: multiple of 8, divides hp, sized so the (n, TH*wp) f32
    intermediate stays <= ~2 MiB (fits the v5e 16 MiB scoped / v7x 64 MiB
    physical VMEM with double-buffered in/out blocks and headroom)."""
    th = 8
    limit = max(8, hp // 2)                   # keep >= 2 row tiles for pipelining
    budget = 2 * 1024 * 1024
    while (th * 2 <= limit and hp % (th * 2) == 0
           and n * (th * 2) * wp * 4 <= budget):
        th *= 2
    return th


def _make_model_kernel(C, TH, Wp, n):
    taps = [(c, dh, dw) for c in range(C) for dh in range(3) for dw in range(3)]

    def kernel(x_ref, m_ref, mean_ref, istd_ref, std_ref,
               w1_ref, b1_ref, w2_ref, b2_ref, o_ref):
        # x_ref: (1, C, Hp+2, Wp+2) raw halo-padded image, VMEM-resident per batch
        # m_ref: (Hp+2, Wp+2) pad mask (1 inside original image, 0 in pads/halo)
        # o_ref: (1, 2, TH*Wp) lane-dense output tile (rows [i*TH, i*TH+TH))
        i = pl.program_id(1)
        r0 = pl.multiple_of(i * TH, TH)
        xt = x_ref[0, :, pl.ds(r0, TH + 2), :]          # (C, TH+2, Wp+2) raw
        mt = m_ref[pl.ds(r0, TH + 2), :]                # (TH+2, Wp+2)

        # Fused normalization: (x - mean) * (1/std), pads forced back to 0.
        mean = mean_ref[...].reshape(C, 1)              # per-channel scalars
        istd = istd_ref[...].reshape(C, 1)
        std = std_ref[...].reshape(C, 1)
        xn = (xt - mean[:, :, None]) * istd[:, :, None] * mt[None, :, :]

        # Build the 3x3 patch matrix in VMEM (no HBM im2col): (C*9, TH*Wp)
        cols = [xn[c, dh:dh + TH, dw:dw + Wp] for (c, dh, dw) in taps]
        p = jnp.stack(cols, axis=0).reshape(C * 9, TH * Wp)

        # conv1 (3x3, C -> n) as a matmul with spatial on the lane axis
        h = jnp.dot(w1_ref[...], p, preferred_element_type=jnp.float32)
        h = h + b1_ref[...]
        h = h * jax.nn.sigmoid(h)                       # SiLU
        # conv2 (1x1, n -> 2)
        y = jnp.dot(w2_ref[...], h, preferred_element_type=jnp.float32)
        y = y + b2_ref[...]
        # fused unnorm epilogue: y * std + mean (first two channels' stats)
        y = y * std[0:2] + mean[0:2]
        o_ref[...] = y[None].astype(o_ref.dtype)

    return kernel


class NormNetPallas:
    """Pallas re-implementation of NormNet.forward (non-interconnection path)."""

    def __init__(self, n: int = 24, n_channels: int = 2, key=None):
        if key is None:
            key = jax.random.PRNGKey(42)
        k1, k2, k3, k4 = jax.random.split(key, 4)
        self.n = n
        self.n_channels = n_channels
        # Stand-in conv weights: w1 (n, C*9) for the 3x3 conv, w2 (2, n) for 1x1.
        self.w1 = jax.random.normal(k1, (n, n_channels * 9), jnp.float32) * 0.05
        self.b1 = jax.random.normal(k2, (n, 1), jnp.float32) * 0.05
        self.w2 = jax.random.normal(k3, (2, n), jnp.float32) * 0.05
        self.b2 = jax.random.normal(k4, (2, 1), jnp.float32) * 0.05

    # --- inner model stand-in with fused norm / unnorm --------------------------
    def _model_unnorm(self, xp, pad_mask, mean, istd, std):
        """xp: (B, C, Hp+2, Wp+2) RAW image, 16-mult pad + conv halo (zeros).
        Returns (B, 2, Hp, Wp) = unnorm(model(norm(x) padded with zeros))."""
        B, C, Hp2, Wp2 = xp.shape
        Hp, Wp = Hp2 - 2, Wp2 - 2
        n = self.n
        TH = _pick_row_tile(Hp, Wp, n)
        NT = Hp // TH
        N = TH * Wp                                     # multiple of 128
        kernel = _make_model_kernel(C, TH, Wp, n)
        y = pl.pallas_call(
            kernel,
            out_shape=jax.ShapeDtypeStruct((B, 2, Hp * Wp), jnp.float32),
            grid=(B, NT),
            in_specs=[
                # full padded image per batch; same block across row tiles -> resident
                pl.BlockSpec((1, C, Hp2, Wp2), lambda b, i: (b, 0, 0, 0)),
                pl.BlockSpec((Hp2, Wp2), lambda b, i: (0, 0)),          # pad mask
                pl.BlockSpec((1, C, 1), lambda b, i: (b, 0, 0)),        # mean
                pl.BlockSpec((1, C, 1), lambda b, i: (b, 0, 0)),        # 1/std
                pl.BlockSpec((1, C, 1), lambda b, i: (b, 0, 0)),        # std
                pl.BlockSpec((n, C * 9), lambda b, i: (0, 0)),
                pl.BlockSpec((n, 1), lambda b, i: (0, 0)),
                pl.BlockSpec((2, n), lambda b, i: (0, 0)),
                pl.BlockSpec((2, 1), lambda b, i: (0, 0)),
            ],
            out_specs=pl.BlockSpec((1, 2, N), lambda b, i: (b, 0, i)),
            compiler_params=pltpu.CompilerParams(
                dimension_semantics=("parallel", "parallel"),
                vmem_limit_bytes=_VMEM_LIMIT),
        )(xp, pad_mask, mean, istd, std, self.w1, self.b1, self.w2, self.b2)
        return y.reshape(B, 2, Hp, Wp)

    # --- NormNet helpers (glue, matching torch semantics) ------------------------
    @staticmethod
    def _complex_to_chan_dim(x):
        b, c, h, w, two = x.shape
        assert two == 2
        return x.transpose(0, 1, 4, 2, 3).reshape(b, 2 * c, h, w)

    @staticmethod
    def _chan_complex_to_last_dim(x):
        b, c2, h, w = x.shape
        assert c2 % 2 == 0
        c = c2 // 2
        return x.reshape(b, c, 2, h, w).transpose(0, 1, 3, 4, 2)

    @staticmethod
    def _pad(x):
        _, _, h, w = x.shape
        w_mult = ((w - 1) | 15) + 1
        h_mult = ((h - 1) | 15) + 1
        w_pad = [math.floor((w_mult - w) / 2), math.ceil((w_mult - w) / 2)]
        h_pad = [math.floor((h_mult - h) / 2), math.ceil((h_mult - h) / 2)]
        # extra +1 ring = the stand-in 3x3 conv's zero 'same' halo, folded into
        # the same pad op so the kernel never branches on boundaries.
        pads = ((h_pad[0] + 1, h_pad[1] + 1), (w_pad[0] + 1, w_pad[1] + 1))
        xp = jnp.pad(x, ((0, 0), (0, 0)) + pads)
        # mask = 1 on the original image, 0 on 16-mult pad + halo; used in-kernel
        # so the fused normalization keeps the padded region exactly zero
        # (torch pads the already-normalized image with zeros).
        mask = jnp.pad(jnp.ones((h, w), jnp.float32), pads)
        return xp, (h_pad, w_pad, h_mult, w_mult), mask

    @staticmethod
    def _unpad(x, h_pad, w_pad, h_mult, w_mult):
        return x[..., h_pad[0]:h_mult - h_pad[1], w_pad[0]:w_mult - w_pad[1]]

    # --- forward ------------------------------------------------------------------
    def __call__(self, x):
        if x.shape[-1] != 2:
            raise ValueError("Last dimension must be 2 for complex.")
        x = self._complex_to_chan_dim(x)
        assert x.shape[1] == self.n_channels
        mean, std, istd = norm_stats(x)                  # Pallas kernel 1 (stats only)
        xp, pad_sizes, pad_mask = self._pad(x)           # raw image + halo + pad mask
        y = self._model_unnorm(xp, pad_mask, mean, istd, std)  # Pallas kernel 2 (fused)
        y = self._unpad(y, *pad_sizes)                   # elementwise unnorm commutes with crop
        y = self._chan_complex_to_last_dim(y)
        return y


# -----------------------------------------------------------------------------
# Pure-JAX reference (XLA) of the same forward, for a correctness check.
# Assumes H, W are already multiples of 16 (true for the test shapes).
# -----------------------------------------------------------------------------
def _reference_forward(net, x):
    b, c, h, w, two = x.shape
    C = 2 * c
    xc = jnp.transpose(x, (0, 1, 4, 2, 3)).reshape(b, C, h, w)
    xf = xc.reshape(b, C, h * w)
    mean = xf.mean(axis=2, keepdims=True)
    var = ((xf - mean) ** 2).sum(axis=2, keepdims=True) / (h * w - 1)
    std = jnp.sqrt(var)
    xn = ((xf - mean) * jax.lax.rsqrt(var)).reshape(b, C, h, w)
    xp = jnp.pad(xn, ((0, 0), (0, 0), (1, 1), (1, 1)))
    cols = [xp[:, ci, dh:dh + h, dw:dw + w]
            for ci in range(C) for dh in range(3) for dw in range(3)]
    p = jnp.stack(cols, axis=1)                               # (b, C*9, h, w)
    h1 = jnp.einsum('nk,bkhw->bnhw', net.w1, p) + net.b1.reshape(1, -1, 1, 1)
    h1 = h1 * jax.nn.sigmoid(h1)
    y = jnp.einsum('mk,bkhw->bmhw', net.w2, h1) + net.b2.reshape(1, -1, 1, 1)
    y = y * std[:, :2].reshape(b, 2, 1, 1) + mean[:, :2].reshape(b, 2, 1, 1)
    return y.reshape(b, c, 2, h, w).transpose(0, 1, 3, 4, 2)


if __name__ == "__main__":
    key = jax.random.PRNGKey(0)
    # (b, c, h, w, 2) with c = 1 complex channel -> 2 real channels in the model.
    x = jax.random.normal(key, (2, 1, 16, 16, 2), dtype=jnp.float32)

    net = NormNetPallas(n=24, n_channels=2, key=jax.random.PRNGKey(42))
    out = jax.block_until_ready(net(x))

    assert out.shape == (2, 1, 16, 16, 2), out.shape
    assert bool(jnp.all(jnp.isfinite(out)))

    ref = jax.block_until_ready(_reference_forward(net, x))
    assert bool(jnp.allclose(out, ref, rtol=1e-3, atol=1e-3)), float(
        jnp.max(jnp.abs(out - ref)))

    print("KERNEL_OK")
</pallas_src>

<mosaic_0001>
module attributes {stable_mosaic.version = 11 : i64} {
  func.func @_stats_kernel(%arg0: i32, %arg1: memref<4x256xf32, #tpu.memory_space<vmem>>, %arg2: memref<4x1xf32, #tpu.memory_space<vmem>>, %arg3: memref<4x1xf32, #tpu.memory_space<vmem>>, %arg4: memref<4x1xf32, #tpu.memory_space<vmem>>) attributes {dimension_semantics = [#tpu.dimension_semantics<parallel>], iteration_bounds = array<i64: 1>, scalar_prefetch = 0 : i64, scratch_operands = 0 : i64, tpu.core_type = #tpu.core_type<tc>, window_params = [{transform_indices = @transform_0, window_bounds = array<i64: 4, 256>}, {transform_indices = @transform_1, window_bounds = array<i64: 4, 1>}, {transform_indices = @transform_2, window_bounds = array<i64: 4, 1>}, {transform_indices = @transform_3, window_bounds = array<i64: 4, 1>}]} {
    %c0 = arith.constant 0 : index
    %c0_0 = arith.constant 0 : index
    %0 = vector.load %arg1[%c0, %c0_0] : memref<4x256xf32, #tpu.memory_space<vmem>>, vector<4x256xf32>
    %cst = arith.constant dense<0.000000e+00> : vector<4xf32>
    %1 = vector.multi_reduction <add>, %0, %cst [1] : vector<4x256xf32> to vector<4xf32>
    %2 = vector.shape_cast %1 : vector<4xf32> to vector<4x1xf32>
    %cst_1 = arith.constant 2.560000e+02 : f32
    %3 = vector.broadcast %cst_1 : f32 to vector<4x1xf32>
    %4 = arith.divf %2, %3 : vector<4x1xf32>
    %5 = vector.broadcast %4 : vector<4x1xf32> to vector<4x256xf32>
    %6 = arith.subf %0, %5 : vector<4x256xf32>
    %7 = arith.mulf %6, %6 : vector<4x256xf32>
    %cst_2 = arith.constant dense<0.000000e+00> : vector<4xf32>
    %8 = vector.multi_reduction <add>, %7, %cst_2 [1] : vector<4x256xf32> to vector<4xf32>
    %9 = vector.shape_cast %8 : vector<4xf32> to vector<4x1xf32>
    %cst_3 = arith.constant 0.00392156886 : f32
    %10 = vector.broadcast %cst_3 : f32 to vector<4x1xf32>
    %11 = arith.mulf %9, %10 : vector<4x1xf32>
    %c0_4 = arith.constant 0 : index
    %c0_5 = arith.constant 0 : index
    %12 = vector.load %arg2[%c0_4, %c0_5] : memref<4x1xf32, #tpu.memory_space<vmem>>, vector<4x1xf32>
    tpu.vector_store %arg2[%c0_4, %c0_5], %4 {strides = array<i32>} : memref<4x1xf32, #tpu.memory_space<vmem>>, vector<4x1xf32>,
    %13 = math.sqrt %11 : vector<4x1xf32>
    %c0_6 = arith.constant 0 : index
    %c0_7 = arith.constant 0 : index
    %14 = vector.load %arg3[%c0_6, %c0_7] : memref<4x1xf32, #tpu.memory_space<vmem>>, vector<4x1xf32>
    tpu.vector_store %arg3[%c0_6, %c0_7], %13 {strides = array<i32>} : memref<4x1xf32, #tpu.memory_space<vmem>>, vector<4x1xf32>,
    %15 = math.rsqrt %11 : vector<4x1xf32>
    %c0_8 = arith.constant 0 : index
    %c0_9 = arith.constant 0 : index
    %16 = vector.load %arg4[%c0_8, %c0_9] : memref<4x1xf32, #tpu.memory_space<vmem>>, vector<4x1xf32>
    tpu.vector_store %arg4[%c0_8, %c0_9], %15 {strides = array<i32>} : memref<4x1xf32, #tpu.memory_space<vmem>>, vector<4x1xf32>,
    return
  }
  func.func @transform_0(%arg0: i32) -> (i32, i32) {
    %c0_i32 = arith.constant 0 : i32
    %c0_i32_0 = arith.constant 0 : i32
    return %arg0, %c0_i32 : i32, i32
  }
  func.func @transform_1(%arg0: i32) -> (i32, i32) {
    %c0_i32 = arith.constant 0 : i32
    %c0_i32_0 = arith.constant 0 : i32
    return %arg0, %c0_i32 : i32, i32
  }
  func.func @transform_2(%arg0: i32) -> (i32, i32) {
    %c0_i32 = arith.constant 0 : i32
    %c0_i32_0 = arith.constant 0 : i32
    return %arg0, %c0_i32 : i32, i32
  }
  func.func @transform_3(%arg0: i32) -> (i32, i32) {
    %c0_i32 = arith.constant 0 : i32
    %c0_i32_0 = arith.constant 0 : i32
    return %arg0, %c0_i32 : i32, i32
  }
}

</mosaic_0001>

<bundles_post_ra>
// kernel: tpu_custom_call.1
= control target key start
LH: loop header
LB: loop body
LE: loop exit
PB: predicated region body
PF: predicated region fallthrough
CT: control target
= control target key end

     0   :  { %9 = vsyncpa [#allocation3], 0  ;;  %s109_s12 = smov [#allocation2]   ;;  %s159_s0 = inlined_call_operand.hbm [shape: f32[4,256], index: 0, kind: input, shape index: {}]   ;;  %s160_s1 = inlined_call_operand.vmem [shape: f32[4,1], index: 1, kind: output, shape index: {0}]   ;;  %s161_s2 = inlined_call_operand.vmem [shape: f32[4,1], index: 2, kind: output, shape index: {1}]   ;;  %s162_s3 = inlined_call_operand.vmem [shape: f32[4,1], index: 3, kind: output, shape index: {2}]  }
   0x1   :  { %s16_s13 = sshll.u32 %s109_s12, 4  ;;  %s85_s16 = scalar_lea.hbm %s159_s0, 128  ;;  %s17_s13 = int_to_ptr.vmem [resolvable:$true] %s16_s13 }
   0x2   :  { %p86_p0 = scmp.ne.s32.totalorder %s159_s0, %s85_s16  ;;  %p89_p1 = scmp.lt.u32.totalorder %s85_s16, %s159_s0 }
   0x4   :  { %p91_p2 = pnand %p89_p1, %p86_p0 }
   0x6   :  { %94 = shalt.err (!%p91_p2)
}
   0x7   :  { %s95_s21 = scalar_lea.vmem %s17_s13, 128  ;;  %p100_p4 = scmp.lt.s32.totalorder %s17_s13, %s17_s13 }
   0x8   :  { %p96_p3 = scmp.ne.s32.totalorder %s17_s13, %s95_s21  ;;  %p101_p5 = scmp.lt.s32.totalorder %s95_s21, %s95_s21 }
   0xa   :  { %p102_p6 = por %p101_p5, %p100_p4 }
   0xc   :  { %p103_p7 = pnand %p102_p6, %p96_p3 }
   0xe   :  { %106 = shalt.err (!%p103_p7)
}
   0xf   :  { %19 = dma.hbm_to_vmem [thread:$0]  %s159_s0, 128, %s17_s13, [#allocation3]  }
  0x10   :  { %107 = dma.done.wait [#allocation3], 128  }
  0x11   :  { %108 = vsyncadd [#allocation3], 4294967168  ;;  %vm27_vm0 = vcmask 1043456   ;;  %v23_v0 = vld [vmem:[#allocation2] sm:$0xff]  ;;  %v110_v5 = vmov 839922192   ;;  %v39_v7 = vlaneseq }
  0x12   :  { %v25_v1 = vcombine.high %v23_v0, %v23_v0  ;;  %v28_v2 = vsel %vm27_vm0, %v23_v0, 0.0  ;;  %v37_v6 = vunpack.c.l.s4 %v110_v5  ;;  %vm55_vm1 = vcmask 3072  }
  0x13   :  { %v40_v9 = vshrl.u32 %v39_v7, 7 }
  0x14   :  { %v29_v3 = vsel %vm27_vm0, %v25_v1, 0.0  ;;  %v38_v8 = vunpack.c.0.s8 %v37_v6 }
  0x15   :  { %v30_v4 = vadd.f32 %v29_v3, %v28_v2 }
  0x16   :  { %v41_v10 = vsub.s32 %v38_v8, %v40_v9 }
  0x17   :  { %31 = vadd.xlane.f32.xlu0 %v30_v4 }
  0xa4   :  { %v32_v11 = vpop.xlane.xlu0 %31 }
  0xa5   :  { %v34_v12 = vmul.f32 0.00390625, %v32_v11 }
  0xa7   :  { %v42_v13 = vrot.slane %v34_v12, %v41_v10  ;;  %56 = vst.msk [vmem:[%s160_s1] sm:$0xf] %vm55_vm1, %v34_v12 }
  0xa9   :  { %v44_v14 = vsub.f32 %v23_v0, %v42_v13 }
  0xab   :  { %v45_v15 = vmul.f32 %v44_v14, %v44_v14 }
  0xad   :  { %v47_v16 = vcombine.high %v45_v15, %v45_v15  ;;  %v49_v17 = vsel %vm27_vm0, %v45_v15, 0.0 }
  0xaf   :  { %v50_v18 = vsel %vm27_vm0, %v47_v16, 0.0 }
  0xb0   :  { %v51_v19 = vadd.f32 %v50_v18, %v49_v17 }
  0xb2   :  { %52 = vadd.xlane.f32.xlu0 %v51_v19 }
 0x13f   :  { %v53_v20 = vpop.xlane.xlu0 %52 }
 0x140   :  { %v54_v21 = vmul.f32 0.003921569, %v53_v20 }
 0x142   :  { %83 = vrsqrt.f32 %v54_v21  ;;  %vm59_vm2 = vcmp.eq.f32.partialorder %v54_v21, inf  ;;  %v62_v24 = vand.u32 2147483648, %v54_v21  ;;  %vm61_vm3 = vcmp.eq.f32.partialorder %v54_v21, 0.0 }
 0x14c   :  { %v84_v22 = vpop.eup %83 }
 0x14d   :  { %v58_v23 = vmul.f32 %v84_v22, %v54_v21  ;;  %66 = vst.msk [vmem:[%s162_s3] sm:$0xf] %vm55_vm1, %v84_v22 }
 0x14f   :  { %v60_v25 = vsel %vm59_vm2, %v54_v21, %v58_v23 }
 0x150   :  { %v63_v26 = vsel %vm61_vm3, %v62_v24, %v60_v25 }
 0x151   :  { %64 = vst.msk [vmem:[%s161_s2] sm:$0xf] %vm55_vm1, %v63_v26 }
 0x152   :  { %79 = vsyncpa [#allocation3], 1 }

</bundles_post_ra>
